<compile_context>
chip_gen: v5e
topology: v5e:2x2
jax: 0.10.0
libtpu: 0.0.40
codegen_flags: <defaults>
</compile_context>

<pallas_src>
import numpy as np
import jax
import jax.numpy as jnp
from jax.experimental import pallas as pl
from jax.experimental.pallas import tpu as pltpu


def _streamflow_kernel(tidx_ref, sel_ref, scat_ref, fill_ref, out_ref):
    """One grid step produces a (TB, ND) block of hourly output rows.

    tidx_ref : VMEM i32 [TB, 1]       nearest-time gather indices for this block
    sel_ref  : VMEM f32 [T_sel, NV]   selected daily streamflow (time-major)
    scat_ref : VMEM f32 [NV, ND]      one-hot column-scatter matrix
    fill_ref : VMEM f32 [1, ND]       0.001 fill row for missing divide columns
    out_ref  : VMEM f32 [TB, ND]      output block
    """
    tb = out_ref.shape[0]
    t_sel = sel_ref.shape[0]

    # One-hot time-gather matrix built on the VPU (no scalar-unit loop).
    tvec = tidx_ref[...]                                          # [TB, 1] int32
    iota = jax.lax.broadcasted_iota(jnp.int32, (tb, t_sel), 1)    # [TB, T_sel]
    gmat = (iota == tvec).astype(jnp.float32)                     # one-hot rows

    # Nearest-neighbour time interpolation == one-hot gather matmul.
    gath = jnp.dot(gmat, sel_ref[...], preferred_element_type=jnp.float32)  # [TB, NV]

    # Column scatter to requested divides + 0.001 fill for missing ones.
    out_ref[...] = (
        jnp.dot(gath, scat_ref[...], preferred_element_type=jnp.float32)
        + fill_ref[...]                                           # (1, ND) broadcast
    )


def streamflow_forward(sel_t, scatter, fill_row, time_idx, t_out, n_div, tb=256):
    """Pallas wrapper. Returns [t_out, n_div] float32 streamflow tensor.

    sel_t    : [T_sel, NV]  selected daily streamflow, time-major, zero-padded
    scatter  : [NV, ND]     one-hot column scatter (valid col k -> divide col j)
    fill_row : [1, ND]      0.001 * (1 - present)
    time_idx : [t_out]      nearest daily index for each hourly timestep
    """
    T_sel, NV = sel_t.shape
    ND = scatter.shape[1]
    t_pad = pl.cdiv(t_out, tb) * tb

    # Padded tail indices point at row 0 (valid); those rows are sliced off.
    tidx = (
        jnp.zeros((t_pad, 1), jnp.int32).at[:t_out, 0].set(time_idx.astype(jnp.int32))
    )

    out = pl.pallas_call(
        _streamflow_kernel,
        out_shape=jax.ShapeDtypeStruct((t_pad, ND), jnp.float32),
        grid=(t_pad // tb,),
        in_specs=[
            pl.BlockSpec((tb, 1), lambda i: (i, 0)),       # time indices per block
            pl.BlockSpec((T_sel, NV), lambda i: (0, 0)),   # constant: DMA'd once
            pl.BlockSpec((NV, ND), lambda i: (0, 0)),      # constant: DMA'd once
            pl.BlockSpec((1, ND), lambda i: (0, 0)),       # constant: DMA'd once
        ],
        out_specs=pl.BlockSpec((tb, ND), lambda i: (i, 0)),
        compiler_params=pltpu.CompilerParams(
            dimension_semantics=("parallel",),             # disjoint output blocks
        ),
    )(tidx, sel_t, scatter, fill_row)
    return out[:t_out, :n_div]


if __name__ == "__main__":
    key = jax.random.PRNGKey(0)

    # --- synthetic "zarr" dataset: Qr with dims (divide_id, time), like xarray ---
    T_SRC, D_SRC = 64, 16
    qr = jax.random.uniform(key, (D_SRC, T_SRC), dtype=jnp.float32)
    ds_divide_ids = [f"cat-{i}" for i in range(D_SRC)]
    divide_id_to_index = {d: i for i, d in enumerate(ds_divide_ids)}

    # --- synthetic "hydrofabric" request (one divide missing from dataset) ---
    hf_divide_ids = ["cat-3", "cat-999", "cat-7", "cat-1", "cat-12", "cat-5"]
    numerical_time_range = np.arange(8, 40)               # 32 selected daily timesteps
    hourly_times = np.linspace(8.0, 39.0, 720)            # 720 target "hourly" times

    # --- divide bookkeeping (glue, mirrors the python loop in forward) ---
    valid_divide_indices, divide_idx_mask = [], []
    for i, d in enumerate(hf_divide_ids):
        if d in divide_id_to_index:
            valid_divide_indices.append(divide_id_to_index[d])
            divide_idx_mask.append(i)
    assert len(valid_divide_indices) != 0, "No valid divide IDs found in this batch."

    # --- isel + nearest-interp index computation (glue) ---
    qr_np = np.asarray(qr)
    sel = qr_np[valid_divide_indices][:, numerical_time_range]   # [n_valid, T_sel]
    src_times = numerical_time_range.astype(np.float64)
    near_idx = np.abs(hourly_times[:, None] - src_times[None, :]).argmin(axis=1)

    n_valid = len(valid_divide_indices)
    n_div = len(hf_divide_ids)
    T_sel = sel.shape[1]
    T_out = hourly_times.shape[0]

    # --- pad to TPU-friendly shapes and build scatter / fill operands ---
    NV_PAD, ND_PAD = 128, 128
    T_SEL_PAD = ((T_sel + 7) // 8) * 8
    sel_t_pad = np.zeros((T_SEL_PAD, NV_PAD), np.float32)
    sel_t_pad[:T_sel, :n_valid] = sel.T                           # time-major
    scatter = np.zeros((NV_PAD, ND_PAD), np.float32)
    for k, j in enumerate(divide_idx_mask):
        scatter[k, j] = 1.0
    present = np.zeros((ND_PAD,), np.float32)
    present[divide_idx_mask] = 1.0
    fill_row = (0.001 * (1.0 - present)).astype(np.float32)[None, :]

    out = streamflow_forward(
        jnp.asarray(sel_t_pad),
        jnp.asarray(scatter),
        jnp.asarray(fill_row),
        jnp.asarray(near_idx, dtype=jnp.int32),
        T_out,
        n_div,
        tb=256,
    )
    out = jax.block_until_ready(out)

    # --- reference (exact torch semantics) ---
    ref = np.full((T_out, n_div), 0.001, dtype=np.float32)
    data = sel[:, near_idx].T.astype(np.float32)                  # [T_out, n_valid]
    ref[:, divide_idx_mask] = data
    np.testing.assert_allclose(np.asarray(out), ref, rtol=1e-6, atol=1e-6)

    print("KERNEL_OK")
</pallas_src>

<mosaic_0001>
module attributes {stable_mosaic.version = 11 : i64} {
  func.func @_streamflow_kernel(%arg0: i32, %arg1: memref<256x1xi32, #tpu.memory_space<vmem>>, %arg2: memref<32x128xf32, #tpu.memory_space<vmem>>, %arg3: memref<128x128xf32, #tpu.memory_space<vmem>>, %arg4: memref<1x128xf32, #tpu.memory_space<vmem>>, %arg5: memref<256x128xf32, #tpu.memory_space<vmem>>) attributes {dimension_semantics = [#tpu.dimension_semantics<parallel>], iteration_bounds = array<i64: 3>, scalar_prefetch = 0 : i64, scratch_operands = 0 : i64, tpu.core_type = #tpu.core_type<tc>, window_params = [{transform_indices = @transform_0, window_bounds = array<i64: 256, 1>}, {pipeline_mode = #tpu.pipeline_mode<synchronous>, transform_indices = @transform_1, window_bounds = array<i64: 32, 128>}, {pipeline_mode = #tpu.pipeline_mode<synchronous>, transform_indices = @transform_2, window_bounds = array<i64: 128, 128>}, {pipeline_mode = #tpu.pipeline_mode<synchronous>, transform_indices = @transform_3, window_bounds = array<i64: 1, 128>}, {transform_indices = @transform_4, window_bounds = array<i64: 256, 128>}]} {
    %c0 = arith.constant 0 : index
    %c0_0 = arith.constant 0 : index
    %0 = vector.load %arg1[%c0, %c0_0] : memref<256x1xi32, #tpu.memory_space<vmem>>, vector<256x1xi32>
    %1 = tpu.iota {dimensions = array<i32: 1>} : vector<256x32xi32>
    %2 = vector.broadcast %0 : vector<256x1xi32> to vector<256x32xi32>
    %3 = arith.cmpi eq, %1, %2 : vector<256x32xi32>
    %4 = arith.extui %3 : vector<256x32xi1> to vector<256x32xi32>
    %5 = arith.sitofp %4 : vector<256x32xi32> to vector<256x32xf32>
    %c0_1 = arith.constant 0 : index
    %c0_2 = arith.constant 0 : index
    %6 = vector.load %arg2[%c0_1, %c0_2] : memref<32x128xf32, #tpu.memory_space<vmem>>, vector<32x128xf32>
    %cst = arith.constant dense<0.000000e+00> : vector<256x128xf32>
    %7 = tpu.matmul %5, %6, %cst {dimension_numbers = #tpu.dot_dimension_numbers<[1], [0], [0], [1], [0, 0, 1, 1], [], []>} : vector<256x32xf32>, vector<32x128xf32>, vector<256x128xf32> -> vector<256x128xf32>
    %c0_3 = arith.constant 0 : index
    %c0_4 = arith.constant 0 : index
    %8 = vector.load %arg3[%c0_3, %c0_4] : memref<128x128xf32, #tpu.memory_space<vmem>>, vector<128x128xf32>
    %cst_5 = arith.constant dense<0.000000e+00> : vector<256x128xf32>
    %9 = tpu.matmul %7, %8, %cst_5 {dimension_numbers = #tpu.dot_dimension_numbers<[1], [0], [0], [1], [0, 0, 1, 1], [], []>} : vector<256x128xf32>, vector<128x128xf32>, vector<256x128xf32> -> vector<256x128xf32>
    %c0_6 = arith.constant 0 : index
    %c0_7 = arith.constant 0 : index
    %10 = vector.load %arg4[%c0_6, %c0_7] : memref<1x128xf32, #tpu.memory_space<vmem>>, vector<1x128xf32>
    %11 = vector.broadcast %10 : vector<1x128xf32> to vector<256x128xf32>
    %12 = arith.addf %9, %11 : vector<256x128xf32>
    %c0_8 = arith.constant 0 : index
    %c0_9 = arith.constant 0 : index
    %13 = vector.load %arg5[%c0_8, %c0_9] : memref<256x128xf32, #tpu.memory_space<vmem>>, vector<256x128xf32>
    tpu.vector_store %arg5[%c0_8, %c0_9], %12 {strides = array<i32>} : memref<256x128xf32, #tpu.memory_space<vmem>>, vector<256x128xf32>,
    return
  }
  func.func @transform_0(%arg0: i32) -> (i32, i32) {
    %c0_i32 = arith.constant 0 : i32
    %c0_i32_0 = arith.constant 0 : i32
    return %arg0, %c0_i32 : i32, i32
  }
  func.func @transform_1(%arg0: i32) -> (i32, i32) {
    %c0_i32 = arith.constant 0 : i32
    %c0_i32_0 = arith.constant 0 : i32
    %c0_i32_1 = arith.constant 0 : i32
    return %c0_i32, %c0_i32_0 : i32, i32
  }
  func.func @transform_2(%arg0: i32) -> (i32, i32) {
    %c0_i32 = arith.constant 0 : i32
    %c0_i32_0 = arith.constant 0 : i32
    %c0_i32_1 = arith.constant 0 : i32
    return %c0_i32, %c0_i32_0 : i32, i32
  }
  func.func @transform_3(%arg0: i32) -> (i32, i32) {
    %c0_i32 = arith.constant 0 : i32
    %c0_i32_0 = arith.constant 0 : i32
    %c0_i32_1 = arith.constant 0 : i32
    return %c0_i32, %c0_i32_0 : i32, i32
  }
  func.func @transform_4(%arg0: i32) -> (i32, i32) {
    %c0_i32 = arith.constant 0 : i32
    %c0_i32_0 = arith.constant 0 : i32
    return %arg0, %c0_i32 : i32, i32
  }
}

</mosaic_0001>

<bundles_post_ra>
// kernel: tpu_custom_call.1
= control target key start
LH: loop header
LB: loop body
LE: loop exit
PB: predicated region body
PF: predicated region fallthrough
CT: control target
= control target key end

     0   :  { %9 = vsyncpa [#allocation3], 0  ;;  %s1511_s0 = inlined_call_operand.vmem [shape: s32[768,1], index: 0, kind: input, shape index: {}]   ;;  %s1512_s1 = inlined_call_operand.vmem [shape: f32[32,128], index: 1, kind: input, shape index: {}]   ;;  %s1513_s2 = inlined_call_operand.vmem [shape: f32[128,128], index: 2, kind: input, shape index: {}]   ;;  %s1514_s3 = inlined_call_operand.vmem [shape: f32[1,128], index: 3, kind: input, shape index: {}]   ;;  %s1515_s4 = inlined_call_operand.hbm [shape: f32[768,128], index: 4, kind: output, shape index: {}]  }
   0x1   :  { %11 = vsyncpa [#allocation3 + $0x1], 0  ;;  %s1135_s15 = smov 0   ;;  %s1137_s16 = smov 0  }
   0x2   :  { %s1139_s17 = smov 0   ;;  %s1141_s18 = smov 0  }
   0x3 LB: > { %s1156_s19 = sadd.s32 4294967295, %s1104_s18   ;;  %s882_s20 = sadd.s32 4294967294, %s1104_s18   ;;  %s1104_s18 = sphi %s1141_s18, %s1521_s18   ;;  %s1100_s17 = sphi %s1139_s17, %s1520_s17   ;;  %s1096_s16 = sphi %s1137_s16, %s1519_s16   ;;  %s1092_s15 = sphi %s1135_s15, %s1518_s15  }
   0x4   : > { %s1160_s21 = sadd.s32 1, %s1104_s18   ;;  %s113_s22 = sadd.s32 1, %s1100_s17 }
   0x5   : > { %s110_s23 = ssub.s32 %s1104_s18, %s1160_s21  ;;  %p123_p0 = scmp.ne.s32.totalorder %s1100_s17, %s1096_s16 }
   0x6   : > { %p111_p1 = scmp.eq.s32.totalorder %s110_s23, 0  ;;  %p124_p2 = scmp.eq.s32.totalorder %s1156_s19, 2 }
   0x7   : > { %p129_p3 = scmp.ne.s32.totalorder %s1096_s16, %s1092_s15  ;;  %p130_p4 = scmp.eq.s32.totalorder %s882_s20, 2 }
   0x8   : > { %s1171_s24 = scalar_select %p111_p1, %s1100_s17, %s113_s22  }
   0x9   : > { %p1173_p5 = por %p124_p2, %p123_p0  ;;  %p1177_p6 = por %p130_p4, %p129_p3 }
   0xa   : > { %p885_p7 = scmp.ge.s32.totalorder %s1104_s18, 1  ;;  %p166_p8 = scmp.lt.s32.totalorder %s1104_s18, 4 }
   0xc   : > { %p167_p9 = pnand %p885_p7, %p166_p8 }
   0xd   : > { %s887_s27 = sshll.u32 (!%p167_p9), %s1156_s19, 5  ;;  %s189_s12 = sand.u32 (!%p167_p9), 1, %s1096_s16  }
   0xe   : > { %170 = sbr.rel (%p167_p9) target bundleno = 637 (0x27d), region = 36  ;;  %p193_p10 = scmp.lt.s32.totalorder (!%p167_p9), %s887_s27, 95 }
   0xf   : > { %s886_s13 = sshll.u32 (!%p167_p9), %s189_s12, 8  ;;  %s958_s23 = sshll.u32 (!%p167_p9), %s1156_s19, 8 }
  0x10   : > { %s1412_s22 = scalar_lea.vmem (!%p167_p9), [#allocation2], %s886_s13  ;;  %s816_s29 = scalar_lea.hbm (!%p167_p9), %s1515_s4, %s958_s23 }
  0x11   : > { %s817_s30 = sshll.u32 (!%p167_p9), %s1412_s22, 4  ;;  %s805_s6 = scalar_lea.sflag (!%p167_p9), [#allocation3], %s189_s12  ;;  %s818_s30 = int_to_ptr.vmem [resolvable:$true] %s817_s30 }
  0x12   : > { %s1062_s10 = scalar_lea.hbm (!%p167_p9), %s1515_s4, 768 }
  0x13   : > { %v1106_v0 = vmov 0   ;;  %s1523_s27 = smov (!%p193_p10, %s887_s27), 95  ;;  %v428_v31 = vld [vmem:[%s1512_s1 + $0x18] sm:$0xff]  ;;  %v427_v32 = vld [vmem:[%s1512_s1 + $0x10] sm:$0xff]  ;;  %v426_v35 = vld [vmem:[%s1512_s1 + $0x8] sm:$0xff]  ;;  %v231_v37 = vlaneseq  ;;  %vm429_vm0 = vcmask 261120  }
  0x14   : > { %1040 = vset.pattern.permute.xlu2 %v1106_v0  ;;  %1039 = vset.pattern.permute.xlu1 %v1106_v0  ;;  %s888_s28 = sshll.u32 %s1523_s27, 3  ;;  %v425_v36 = vld [vmem:[%s1512_s1] sm:$0xff]  ;;  %v1107_v42 = vmov 0.0  }
  0x15   : > { %1038 = vset.pattern.permute.xlu0 %v1106_v0  ;;  %s1187_s5 = scalar_lea.vmem %s1511_s0, %s888_s28  ;;  %538 = vmatpush.msra.mxu0 %v428_v31  ;;  %v1233_v39 = vand.u32 127, %v231_v37 }
  0x16   : > { %v203_v1 = vld [vmem:[%s1187_s5 + $0x20] sm:$0xff]  ;;  %v201_v2 = vld [vmem:[%s1187_s5 + $0x10] sm:$0xff]  ;;  %v204_v4 = vld [vmem:[%s1187_s5 + $0x28] sm:$0xff]  ;;  %959 = vmatpush.msra.mxu3 %v428_v31 }
  0x17   : > { %v199_v3 = vld [vmem:[%s1187_s5] sm:$0xff]  ;;  %246 = vperm.xlu2 %1040, %v203_v1   ;;  %240 = vperm.xlu1 %1039, %v201_v2   ;;  %v202_v5 = vld [vmem:[%s1187_s5 + $0x18] sm:$0xff]  ;;  %v200_v6 = vld [vmem:[%s1187_s5 + $0x8] sm:$0xff] }
  0x18   : > { %234 = vperm.xlu0 %1038, %v199_v3   ;;  %v207_v7 = vld [vmem:[%s1187_s5 + $0x40] sm:$0xff]  ;;  %v206_v8 = vld [vmem:[%s1187_s5 + $0x38] sm:$0xff]  ;;  %v205_v9 = vld [vmem:[%s1187_s5 + $0x30] sm:$0xff]  ;;  %539 = vmatpush.msra.mxu0 %v427_v32 }
  0x19   : > { %v210_v10 = vld [vmem:[%s1187_s5 + $0x58] sm:$0xff]  ;;  %v209_v11 = vld [vmem:[%s1187_s5 + $0x50] sm:$0xff]  ;;  %v208_v12 = vld [vmem:[%s1187_s5 + $0x48] sm:$0xff]  ;;  %960 = vmatpush.msra.mxu3 %v427_v32 }
  0x1a   : > { %v213_v13 = vld [vmem:[%s1187_s5 + $0x70] sm:$0xff]  ;;  %v212_v14 = vld [vmem:[%s1187_s5 + $0x68] sm:$0xff]  ;;  %v211_v15 = vld [vmem:[%s1187_s5 + $0x60] sm:$0xff]  ;;  %540 = vmatpush.msra.mxu0 %v426_v35 }
  0x1b   : > { %v215_v16 = vld [vmem:[%s1187_s5 + $0x80] sm:$0xff]  ;;  %v217_v17 = vld [vmem:[%s1187_s5 + $0x90] sm:$0xff]  ;;  %v214_v18 = vld [vmem:[%s1187_s5 + $0x78] sm:$0xff]  ;;  %961 = vmatpush.msra.mxu3 %v426_v35 }
  0x1c   : > { %v219_v19 = vld [vmem:[%s1187_s5 + $0xa0] sm:$0xff]  ;;  %v216_v20 = vld [vmem:[%s1187_s5 + $0x88] sm:$0xff]  ;;  %v218_v21 = vld [vmem:[%s1187_s5 + $0x98] sm:$0xff]  ;;  %541 = vmatpush.msra.mxu0 %v425_v36 }
  0x1d   : > { %v222_v22 = vld [vmem:[%s1187_s5 + $0xb8] sm:$0xff]  ;;  %v221_v23 = vld [vmem:[%s1187_s5 + $0xb0] sm:$0xff]  ;;  %v220_v24 = vld [vmem:[%s1187_s5 + $0xa8] sm:$0xff]  ;;  %962 = vmatpush.msra.mxu3 %v425_v36 }
  0x1e   : > { %v225_v25 = vld [vmem:[%s1187_s5 + $0xd0] sm:$0xff]  ;;  %v224_v26 = vld [vmem:[%s1187_s5 + $0xc8] sm:$0xff]  ;;  %v223_v27 = vld [vmem:[%s1187_s5 + $0xc0] sm:$0xff] }
  0x1f   : > { %249 = vperm.xlu2 %1040, %v204_v4   ;;  %243 = vperm.xlu1 %1039, %v202_v5   ;;  %v228_v28 = vld [vmem:[%s1187_s5 + $0xe8] sm:$0xff]  ;;  %v227_v29 = vld [vmem:[%s1187_s5 + $0xe0] sm:$0xff]  ;;  %v226_v30 = vld [vmem:[%s1187_s5 + $0xd8] sm:$0xff] }
  0x20   : > { %237 = vperm.xlu0 %1038, %v200_v6   ;;  %v230_v33 = vld [vmem:[%s1187_s5 + $0xf8] sm:$0xff]  ;;  %v229_v34 = vld [vmem:[%s1187_s5 + $0xf0] sm:$0xff]  ;;  %v639_v36 = vld [vmem:[%s1513_s2] sm:$0xff]  ;;  %s819_s5 = sshll.u32 %s816_s29, 4  ;;  %s820_s5 = int_to_ptr.hbm [resolvable:$true] %s819_s5 }
  0x21   : > { %s1056_s19 = sshra.s32 %s820_s5, 4  ;;  %s1057_s19 = int_to_ptr.hbm [resolvable:$true] %s1056_s19 }
  0x22   : > { %s1058_s7 = scalar_lea.hbm %s1057_s19, 256  ;;  %p1063_p0 = scmp.lt.s32.totalorder %s1057_s19, %s1515_s4 }
  0x23   : > { %p1059_p11 = scmp.ne.s32.totalorder %s1057_s19, %s1058_s7  ;;  %p1064_p1 = scmp.lt.s32.totalorder %s1062_s10, %s1058_s7 }
  0x25   : > { %p1060_p12 = pnand %p1059_p11, %p1173_p5  ;;  %p1065_p2 = por %p1064_p1, %p1063_p0 }
  0x27   : > { %258 = vperm.xlu2 %1040, %v207_v7   ;;  %255 = vperm.xlu1 %1039, %v206_v8   ;;  %v654_v8 = vld [vmem:[%s1513_s2 + $0x78] sm:$0xff]  ;;  %p1061_p13 = pneg %p1060_p12 }
  0x28   : > { %252 = vperm.xlu0 %1038, %v205_v9   ;;  %659 = vmatpush.msra.mxu1 %v654_v8 }
  0x29   : > { %963 = vmatpush.msra.mxu2 %v654_v8  ;;  %964 = vmatpush.msrb.mxu3 %v654_v8  ;;  %p1066_p3 = pnand %p1065_p2, %p1061_p13 }
  0x2f   : > { %267 = vperm.xlu2 %1040, %v210_v10   ;;  %264 = vperm.xlu1 %1039, %v209_v11  }
  0x30   : > { %261 = vperm.xlu0 %1038, %v208_v12   ;;  %v653_v12 = vld [vmem:[%s1513_s2 + $0x70] sm:$0xff] }
  0x31   : > { %660 = vmatpush.msra.mxu1 %v653_v12  ;;  %965 = vmatpush.msra.mxu2 %v653_v12 }
  0x32   : > { %966 = vmatpush.msrb.mxu3 %v653_v12 }
  0x37   : > { %276 = vperm.xlu2 %1040, %v213_v13   ;;  %273 = vperm.xlu1 %1039, %v212_v14   ;;  %v652_v13 = vld [vmem:[%s1513_s2 + $0x68] sm:$0xff] }
  0x38   : > { %270 = vperm.xlu0 %1038, %v211_v15   ;;  %v651_v15 = vld [vmem:[%s1513_s2 + $0x60] sm:$0xff]  ;;  %661 = vmatpush.msra.mxu1 %v652_v13 }
  0x39   : > { %967 = vmatpush.msra.mxu2 %v652_v13  ;;  %968 = vmatpush.msrb.mxu3 %v652_v13 }
  0x3a   : > { %662 = vmatpush.msra.mxu1 %v651_v15 }
  0x3b   : > { %969 = vmatpush.msra.mxu2 %v651_v15  ;;  %970 = vmatpush.msrb.mxu3 %v651_v15 }
  0x3f   : > { %282 = vperm.xlu2 %1040, %v215_v16   ;;  %288 = vperm.xlu1 %1039, %v217_v17   ;;  %v650_v16 = vld [vmem:[%s1513_s2 + $0x58] sm:$0xff] }
  0x40   : > { %279 = vperm.xlu0 %1038, %v214_v18   ;;  %663 = vmatpush.msra.mxu1 %v650_v16 }
  0x41   : > { %971 = vmatpush.msra.mxu2 %v650_v16  ;;  %972 = vmatpush.msrb.mxu3 %v650_v16 }
  0x47   : > { %294 = vperm.xlu2 %1040, %v219_v19   ;;  %285 = vperm.xlu1 %1039, %v216_v20   ;;  %v649_v19 = vld [vmem:[%s1513_s2 + $0x50] sm:$0xff]  ;;  %v648_v20 = vld [vmem:[%s1513_s2 + $0x48] sm:$0xff] }
  0x48   : > { %291 = vperm.xlu0 %1038, %v218_v21   ;;  %664 = vmatpush.msra.mxu1 %v649_v19 }
  0x49   : > { %973 = vmatpush.msra.mxu2 %v649_v19  ;;  %974 = vmatpush.msrb.mxu3 %v649_v19 }
  0x4a   : > { %665 = vmatpush.msra.mxu1 %v648_v20 }
  0x4b   : > { %975 = vmatpush.msra.mxu2 %v648_v20  ;;  %976 = vmatpush.msrb.mxu3 %v648_v20 }
  0x4f   : > { %303 = vperm.xlu2 %1040, %v222_v22   ;;  %300 = vperm.xlu1 %1039, %v221_v23   ;;  %v647_v22 = vld [vmem:[%s1513_s2 + $0x40] sm:$0xff]  ;;  %v646_v23 = vld [vmem:[%s1513_s2 + $0x38] sm:$0xff] }
  0x50   : > { %297 = vperm.xlu0 %1038, %v220_v24   ;;  %666 = vmatpush.msra.mxu1 %v647_v22 }
  0x51   : > { %977 = vmatpush.msra.mxu2 %v647_v22  ;;  %978 = vmatpush.msrb.mxu3 %v647_v22 }
  0x52   : > { %667 = vmatpush.msra.mxu1 %v646_v23 }
  0x53   : > { %979 = vmatpush.msra.mxu2 %v646_v23  ;;  %980 = vmatpush.msrb.mxu3 %v646_v23 }
  0x57   : > { %312 = vperm.xlu2 %1040, %v225_v25   ;;  %309 = vperm.xlu1 %1039, %v224_v26   ;;  %v645_v26 = vld [vmem:[%s1513_s2 + $0x30] sm:$0xff] }
  0x58   : > { %306 = vperm.xlu0 %1038, %v223_v27   ;;  %v644_v27 = vld [vmem:[%s1513_s2 + $0x28] sm:$0xff]  ;;  %668 = vmatpush.msra.mxu1 %v645_v26 }
  0x59   : > { %981 = vmatpush.msra.mxu2 %v645_v26  ;;  %982 = vmatpush.msrb.mxu3 %v645_v26 }
  0x5a   : > { %669 = vmatpush.msra.mxu1 %v644_v27 }
  0x5b   : > { %983 = vmatpush.msra.mxu2 %v644_v27  ;;  %984 = vmatpush.msrb.mxu3 %v644_v27 }
  0x5f   : > { %321 = vperm.xlu2 %1040, %v228_v28   ;;  %318 = vperm.xlu1 %1039, %v227_v29   ;;  %v643_v29 = vld [vmem:[%s1513_s2 + $0x20] sm:$0xff] }
  0x60   : > { %315 = vperm.xlu0 %1038, %v226_v30   ;;  %v642_v30 = vld [vmem:[%s1513_s2 + $0x18] sm:$0xff]  ;;  %670 = vmatpush.msra.mxu1 %v643_v29 }
  0x61   : > { %985 = vmatpush.msra.mxu2 %v643_v29  ;;  %986 = vmatpush.msrb.mxu3 %v643_v29 }
  0x62   : > { %671 = vmatpush.msra.mxu1 %v642_v30 }
  0x63   : > { %987 = vmatpush.msra.mxu2 %v642_v30  ;;  %988 = vmatpush.msrb.mxu3 %v642_v30 }
  0x67   : > { %327 = vperm.xlu1 %1039, %v230_v33   ;;  %v641_v33 = vld [vmem:[%s1513_s2 + $0x10] sm:$0xff] }
  0x68   : > { %324 = vperm.xlu0 %1038, %v229_v34   ;;  %v640_v34 = vld [vmem:[%s1513_s2 + $0x8] sm:$0xff]  ;;  %672 = vmatpush.msra.mxu1 %v641_v33 }
  0x69   : > { %989 = vmatpush.msra.mxu2 %v641_v33  ;;  %990 = vmatpush.msrb.mxu3 %v641_v33 }
  0x6a   : > { %673 = vmatpush.msra.mxu1 %v640_v34 }
  0x6b   : > { %991 = vmatpush.msra.mxu2 %v640_v34  ;;  %992 = vmatpush.msrb.mxu3 %v640_v34 }
  0x6c   : > { %674 = vmatpush.msra.mxu1 %v639_v36 }
  0x6d   : > { %993 = vmatpush.msra.mxu2 %v639_v36  ;;  %994 = vmatpush.msrb.mxu3 %v639_v36 }
  0x71   : > { %v247_v38 = vpop.permute.xlu2 %246 }
  0x72   : > { %vm333_vm5 = vcmp.eq.s32.totalorder %v1233_v39, %v247_v38 }
  0x73   : > { %v893_v57 = vsel %vm333_vm5, 1.0, %v1107_v42 }
  0x79   : > { %v250_v44 = vpop.permute.xlu2 %249 }
  0x7a   : > { %vm334_vm6 = vcmp.eq.s32.totalorder %v1233_v39, %v250_v44 }
  0x7b   : > { %v894_v63 = vsel %vm334_vm6, 1.0, %v1107_v42 }
  0x81   : > { %v259_v48 = vpop.permute.xlu2 %258 }
  0x82   : > { %vm337_vm12 = vcmp.eq.s32.totalorder %v1233_v39, %v259_v48 }
  0x83   : > { %v897_v10 = vsel %vm337_vm12, 1.0, %v1107_v42 }
  0x89   : > { %v241_v40 = vpop.permute.xlu1 %240  ;;  %v1247_v53 = vpop.permute.xlu2 %267 }
  0x8a   : > { %v235_v41 = vpop.permute.xlu0 %234  ;;  %vm331_vm3 = vcmp.eq.s32.totalorder %v1233_v39, %v241_v40 }
  0x8b   : > { %vm329_vm1 = vcmp.eq.s32.totalorder %v1233_v39, %v235_v41  ;;  %v891_v50 = vsel %vm331_vm3, 1.0, %v1107_v42  ;;  %vm340_vm3 = vcmp.eq.s32.totalorder %v1233_v39, %v1247_v53 }
  0x8c   : > { %v889_v43 = vsel %vm329_vm1, 1.0, %v1107_v42  ;;  %v900_v31 = vsel %vm340_vm3, 1.0, %v1107_v42 }
  0x8d   : > { %921 = vmatmul.msk.f32.vlgmr.msra.gmra.mxu0 %vm429_vm0, %v889_v43 }
  0x91   : > { %v244_v45 = vpop.permute.xlu1 %243  ;;  %v1257_v59 = vpop.permute.xlu2 %276 }
  0x92   : > { %v238_v46 = vpop.permute.xlu0 %237  ;;  %vm332_vm4 = vcmp.eq.s32.totalorder %v1233_v39, %v244_v45 }
  0x93   : > { %vm330_vm2 = vcmp.eq.s32.totalorder %v1233_v39, %v238_v46  ;;  %v892_v55 = vsel %vm332_vm4, 1.0, %v1107_v42 }
  0x94   : > { %v890_v47 = vsel %vm330_vm2, 1.0, %v1107_v42 }
  0x95   : > { %922 = vmatmul.msk.f32.gmra.mxu0 %vm429_vm0, %v890_v47 }
  0x99   : > { %v256_v49 = vpop.permute.xlu1 %255  ;;  %v1268_v0 = vpop.permute.xlu2 %282 }
  0x9a   : > { %v253_v51 = vpop.permute.xlu0 %252  ;;  %vm336_vm10 = vcmp.eq.s32.totalorder %v1233_v39, %v256_v49 }
  0x9b   : > { %vm335_vm8 = vcmp.eq.s32.totalorder %v1233_v39, %v253_v51  ;;  %v896_v5 = vsel %vm336_vm10, 1.0, %v1107_v42 }
  0x9c   : > { %v895_v2 = vsel %vm335_vm8, 1.0, %v1107_v42 }
  0x9d   : > { %923 = vmatmul.msk.f32.gmra.mxu0 %vm429_vm0, %v891_v50 }
  0xa1   : > { %v1245_v52 = vpop.permute.xlu1 %264  ;;  %v295_v4 = vpop.permute.xlu2 %294 }
  0xa2   : > { %v262_v54 = vpop.permute.xlu0 %261  ;;  %vm349_vm11 = vcmp.eq.s32.totalorder %v1233_v39, %v295_v4  ;;  %vm339_vm1 = vcmp.eq.s32.totalorder %v1233_v39, %v1245_v52 }
  0xa3   : > { %v909_v6 = vsel %vm349_vm11, 1.0, %v1107_v42  ;;  %vm338_vm14 = vcmp.eq.s32.totalorder %v1233_v39, %v262_v54  ;;  %v899_v24 = vsel %vm339_vm1, 1.0, %v1107_v42 }
  0xa4   : > { %v898_v17 = vsel %vm338_vm14, 1.0, %v1107_v42 }
  0xa5   : > { %924 = vmatmul.msk.f32.gmra.mxu0 %vm429_vm0, %v892_v55 }
  0xa9   : > { %v1252_v56 = vpop.permute.xlu1 %273  ;;  %v304_v21 = vpop.permute.xlu2 %303 }
  0xaa   : > { %v1255_v58 = vpop.permute.xlu0 %270  ;;  %vm352_vm2 = vcmp.eq.s32.totalorder %v1233_v39, %v304_v21 }
  0xab   : > { %v912_v25 = vsel %vm352_vm2, 1.0, %v1107_v42  ;;  %vm341_vm5 = vcmp.eq.s32.totalorder %v1233_v39, %v1255_v58 }
  0xac   : > { %v901_v37 = vsel %vm341_vm5, 1.0, %v1107_v42 }
  0xad   : > { %925 = vmatmul.msk.f32.gmra.mxu0 %vm429_vm0, %v893_v57 }
  0xb1   : > { %v289_v60 = vpop.permute.xlu1 %288  ;;  %v313_v40 = vpop.permute.xlu2 %312 }
  0xb2   : > { %vm347_vm7 = vcmp.eq.s32.totalorder %v1233_v39, %v289_v60  ;;  %v1262_v61 = vpop.permute.xlu0 %279  ;;  %vm355_vm8 = vcmp.eq.s32.totalorder %v1233_v39, %v313_v40 }
  0xb3   : > { %v907_v62 = vsel %vm347_vm7, 1.0, %v1107_v42  ;;  %vm342_vm7 = vcmp.eq.s32.totalorder %v1233_v39, %v1252_v56  ;;  %v915_v43 = vsel %vm355_vm8, 1.0, %v1107_v42  ;;  %vm344_vm11 = vcmp.eq.s32.totalorder %v1233_v39, %v1262_v61 }
  0xb4   : > { %939 = vmatmul.msk.f32.vlgmr.msra.gmra.mxu3 %vm429_vm0, %v907_v62  ;;  %v902_v41 = vsel %vm342_vm7, 1.0, %v1107_v42  ;;  %v904_v48 = vsel %vm344_vm11, 1.0, %v1107_v42 }
  0xb5   : > { %926 = vmatmul.msk.f32.gmra.mxu0 %vm429_vm0, %v894_v63 }
  0xb9   : > { %v1280_v7 = vpop.permute.xlu1 %285  ;;  %v322_v50 = vpop.permute.xlu2 %321 }
  0xba   : > { %v292_v1 = vpop.permute.xlu0 %291  ;;  %vm358_vm14 = vcmp.eq.s32.totalorder %v1233_v39, %v322_v50 }
  0xbb   : > { %vm348_vm9 = vcmp.eq.s32.totalorder %v1233_v39, %v292_v1  ;;  %v918_v53 = vsel %vm358_vm14, 1.0, %v1107_v42 }
  0xbc   : > { %v908_v3 = vsel %vm348_vm9, 1.0, %v1107_v42  ;;  %vm343_vm9 = vcmp.eq.s32.totalorder %v1233_v39, %v1257_v59 }
  0xbd   : > { %927 = vmatmul.msk.f32.gmra.mxu0 %vm429_vm0, %v895_v2  ;;  %940 = vmatmul.msk.f32.gmra.mxu3 %vm429_vm0, %v908_v3  ;;  %v903_v45 = vsel %vm343_vm9, 1.0, %v1107_v42 }
  0xc1   : > { %v301_v14 = vpop.permute.xlu1 %300 }
  0xc2   : > { %v298_v9 = vpop.permute.xlu0 %297  ;;  %vm351_vm15 = vcmp.eq.s32.totalorder %v1233_v39, %v301_v14 }
  0xc3   : > { %vm350_vm13 = vcmp.eq.s32.totalorder %v1233_v39, %v298_v9  ;;  %v911_v18 = vsel %vm351_vm15, 1.0, %v1107_v42  ;;  %vm346_vm15 = vcmp.eq.s32.totalorder %v1233_v39, %v1280_v7 }
  0xc4   : > { %v910_v11 = vsel %vm350_vm13, 1.0, %v1107_v42  ;;  %vm345_vm13 = vcmp.eq.s32.totalorder %v1233_v39, %v1268_v0  ;;  %v906_v56 = vsel %vm346_vm15, 1.0, %v1107_v42 }
  0xc5   : > { %928 = vmatmul.msk.f32.gmra.mxu0 %vm429_vm0, %v896_v5  ;;  %941 = vmatmul.msk.f32.gmra.mxu3 %vm429_vm0, %v909_v6  ;;  %v905_v52 = vsel %vm345_vm13, 1.0, %v1107_v42 }
  0xc9   : > { %v310_v35 = vpop.permute.xlu1 %309 }
  0xca   : > { %v307_v28 = vpop.permute.xlu0 %306  ;;  %vm354_vm6 = vcmp.eq.s32.totalorder %v1233_v39, %v310_v35 }
  0xcb   : > { %vm353_vm4 = vcmp.eq.s32.totalorder %v1233_v39, %v307_v28  ;;  %v914_v38 = vsel %vm354_vm6, 1.0, %v1107_v42 }
  0xcc   : > { %v913_v32 = vsel %vm353_vm4, 1.0, %v1107_v42 }
  0xcd   : > { %929 = vmatmul.msk.f32.gmra.mxu0 %vm429_vm0, %v897_v10  ;;  %942 = vmatmul.msk.f32.gmra.mxu3 %vm429_vm0, %v910_v11 }
  0xd1   : > { %v319_v47 = vpop.permute.xlu1 %318 }
  0xd2   : > { %v316_v44 = vpop.permute.xlu0 %315  ;;  %vm357_vm12 = vcmp.eq.s32.totalorder %v1233_v39, %v319_v47 }
  0xd3   : > { %vm356_vm10 = vcmp.eq.s32.totalorder %v1233_v39, %v316_v44  ;;  %v917_v49 = vsel %vm357_vm12, 1.0, %v1107_v42 }
  0xd4   : > { %v916_v46 = vsel %vm356_vm10, 1.0, %v1107_v42 }
  0xd5   : > { %930 = vmatmul.msk.f32.gmra.mxu0 %vm429_vm0, %v898_v17  ;;  %943 = vmatmul.msk.f32.gmra.mxu3 %vm429_vm0, %v911_v18  ;;  %v1409_v18 = vld [vmem:[%s1514_s3] ss:$0 sm:$0xff] }
  0xd9   : > { %v328_v58 = vpop.permute.xlu1 %327 }
  0xda   : > { %v325_v54 = vpop.permute.xlu0 %324  ;;  %vm360_vm2 = vcmp.eq.s32.totalorder %v1233_v39, %v328_v58 }
  0xdb   : > { %vm359_vm1 = vcmp.eq.s32.totalorder %v1233_v39, %v325_v54  ;;  %v920_v60 = vsel %vm360_vm2, 1.0, %v1107_v42 }
  0xdc   : > { %v919_v57 = vsel %vm359_vm1, 1.0, %v1107_v42 }
  0xdd   : > { %931 = vmatmul.msk.f32.gmra.mxu0 %vm429_vm0, %v899_v24  ;;  %944 = vmatmul.msk.f32.gmra.mxu3 %vm429_vm0, %v912_v25 }
  0xe5   : > { %932 = vmatmul.msk.f32.gmra.mxu0 %vm429_vm0, %v900_v31  ;;  %945 = vmatmul.msk.f32.gmra.mxu3 %vm429_vm0, %v913_v32 }
  0xed   : > { %933 = vmatmul.msk.f32.gmra.mxu0 %vm429_vm0, %v901_v37  ;;  %946 = vmatmul.msk.f32.gmra.mxu3 %vm429_vm0, %v914_v38 }
  0xf5   : > { %934 = vmatmul.msk.f32.gmra.mxu0 %vm429_vm0, %v902_v41  ;;  %947 = vmatmul.msk.f32.gmra.mxu3 %vm429_vm0, %v915_v43 }
  0xfd   : > { %935 = vmatmul.msk.f32.gmra.mxu0 %vm429_vm0, %v903_v45  ;;  %948 = vmatmul.msk.f32.gmra.mxu3 %vm429_vm0, %v916_v46 }
 0x105   : > { %936 = vmatmul.msk.f32.gmra.mxu0 %vm429_vm0, %v904_v48  ;;  %949 = vmatmul.msk.f32.gmra.mxu3 %vm429_vm0, %v917_v49 }
 0x10a   : > { %v543_v51 = vpop.f32.mrf.mxu0 }
 0x10b   : > { %675 = vmatmul.f32.vlgmr.msra.gmra.mxu1 %v543_v51 }
 0x10d   : > { %937 = vmatmul.msk.f32.gmra.mxu0 %vm429_vm0, %v905_v52  ;;  %950 = vmatmul.msk.f32.gmra.mxu3 %vm429_vm0, %v918_v53 }
 0x112   : > { %v546_v55 = vpop.f32.mrf.mxu0 }
 0x113   : > { %678 = vmatmul.f32.gmra.mxu1 %v546_v55 }
 0x115   : > { %938 = vmatmul.msk.f32.gmra.mxu0 %vm429_vm0, %v906_v56  ;;  %951 = vmatmul.msk.f32.gmra.mxu3 %vm429_vm0, %v919_v57 }
 0x11a   : > { %v549_v59 = vpop.f32.mrf.mxu0 }
 0x11b   : > { %681 = vmatmul.f32.gmra.mxu1 %v549_v59 }
 0x11d   : > { %952 = vmatmul.msk.f32.gmra.mxu3 %vm429_vm0, %v920_v60 }
 0x122   : > { %v552_v61 = vpop.f32.mrf.mxu0 }
 0x123   : > { %684 = vmatmul.f32.gmra.mxu1 %v552_v61 }
 0x12a   : > { %v555_v62 = vpop.f32.mrf.mxu0 }
 0x12b   : > { %687 = vmatmul.f32.gmra.mxu1 %v555_v62 }
 0x132   : > { %v558_v63 = vpop.f32.mrf.mxu0 }
 0x133   : > { %690 = vmatmul.f32.gmra.mxu1 %v558_v63 }
 0x137   : > { %v597_v0 = vpop.f32.mrf.mxu3 }
 0x13a   : > { %v561_v1 = vpop.f32.mrf.mxu0 }
 0x13b   : > { %693 = vmatmul.f32.gmra.mxu1 %v561_v1 }
 0x140   : > { %v600_v2 = vpop.f32.mrf.mxu3 }
 0x142   : > { %v564_v3 = vpop.f32.mrf.mxu0 }
 0x143   : > { %696 = vmatmul.f32.gmra.mxu1 %v564_v3 }
 0x148   : > { %v603_v4 = vpop.f32.mrf.mxu3 }
 0x14a   : > { %v567_v39 = vpop.f32.mrf.mxu0 }
 0x14b   : > { %699 = vmatmul.f32.gmra.mxu1 %v567_v39 }
 0x150   : > { %v606_v5 = vpop.f32.mrf.mxu3 }
 0x152   : > { %v570_v6 = vpop.f32.mrf.mxu0 }
 0x153   : > { %702 = vmatmul.f32.gmra.mxu1 %v570_v6 }
 0x158   : > { %v609_v42 = vpop.f32.mrf.mxu3 }
 0x15a   : > { %v573_v7 = vpop.f32.mrf.mxu0 }
 0x15b   : > { %705 = vmatmul.f32.gmra.mxu1 %v573_v7 }
 0x160   : > { %v612_v8 = vpop.f32.mrf.mxu3 }
 0x162   : > { %v576_v9 = vpop.f32.mrf.mxu0 }
 0x163   : > { %708 = vmatmul.f32.gmra.mxu1 %v576_v9 }
 0x168   : > { %v615_v10 = vpop.f32.mrf.mxu3 }
 0x16a   : > { %v579_v11 = vpop.f32.mrf.mxu0 }
 0x16b   : > { %711 = vmatmul.f32.gmra.mxu1 %v579_v11 }
 0x170   : > { %v618_v12 = vpop.f32.mrf.mxu3 }
 0x172   : > { %v582_v13 = vpop.f32.mrf.mxu0 }
 0x173   : > { %714 = vmatmul.f32.gmra.mxu1 %v582_v13 }
 0x178   : > { %v621_v14 = vpop.f32.mrf.mxu3 }
 0x17a   : > { %v585_v15 = vpop.f32.mrf.mxu0 }
 0x17b   : > { %717 = vmatmul.f32.gmra.mxu1 %v585_v15 }
 0x180   : > { %v624_v16 = vpop.f32.mrf.mxu3 }
 0x182   : > { %v588_v17 = vpop.f32.mrf.mxu0 }
 0x183   : > { %720 = vmatmul.f32.vlgmr.msra.gmra.mxu2 %v588_v17 }
 0x188   : > { %v627_v19 = vpop.f32.mrf.mxu3  ;;  %v676_v20 = vpop.f32.mrf.mxu1 }
 0x189   : > { %v677_v21 = vadd.f32 %v1409_v18, %v676_v20 }
 0x18a   : > { %v591_v22 = vpop.f32.mrf.mxu0 }
 0x18b   : > { %772 = vst [vmem:[%s1412_s22] sm:$0xff] %v677_v21  ;;  %723 = vmatmul.f32.gmra.mxu2 %v591_v22 }
 0x190   : > { %v630_v23 = vpop.f32.mrf.mxu3  ;;  %v679_v24 = vpop.f32.mrf.mxu1 }
 0x191   : > { %v680_v25 = vadd.f32 %v1409_v18, %v679_v24 }
 0x192   : > { %v594_v26 = vpop.f32.mrf.mxu0 }
 0x193   : > { %773 = vst [vmem:[%s1412_s22 + $0x8] sm:$0xff] %v680_v25  ;;  %726 = vmatmul.f32.gmra.mxu2 %v594_v26 }
 0x198   : > { %v633_v27 = vpop.f32.mrf.mxu3  ;;  %v682_v28 = vpop.f32.mrf.mxu1 }
 0x199   : > { %v683_v29 = vadd.f32 %v1409_v18, %v682_v28  ;;  %765 = vmatmul.f32.vlgmr.msrb.gmra.mxu3 %v633_v27 }
 0x19b   : > { %774 = vst [vmem:[%s1412_s22 + $0x10] sm:$0xff] %v683_v29  ;;  %729 = vmatmul.f32.gmra.mxu2 %v597_v0 }
 0x1a0   : > { %v636_v30 = vpop.f32.mrf.mxu3  ;;  %v685_v31 = vpop.f32.mrf.mxu1 }
 0x1a1   : > { %v686_v32 = vadd.f32 %v1409_v18, %v685_v31  ;;  %768 = vmatmul.f32.gmra.mxu3 %v636_v30 }
 0x1a3   : > { %775 = vst [vmem:[%s1412_s22 + $0x18] sm:$0xff] %v686_v32  ;;  %732 = vmatmul.f32.gmra.mxu2 %v600_v2 }
 0x1a8   : > { %v688_v33 = vpop.f32.mrf.mxu1 }
 0x1a9   : > { %v689_v34 = vadd.f32 %v1409_v18, %v688_v33 }
 0x1ab   : > { %776 = vst [vmem:[%s1412_s22 + $0x20] sm:$0xff] %v689_v34  ;;  %735 = vmatmul.f32.gmra.mxu2 %v603_v4 }
 0x1b0   : > { %v691_v35 = vpop.f32.mrf.mxu1 }
 0x1b1   : > { %v692_v36 = vadd.f32 %v1409_v18, %v691_v35 }
 0x1b3   : > { %777 = vst [vmem:[%s1412_s22 + $0x28] sm:$0xff] %v692_v36  ;;  %738 = vmatmul.f32.gmra.mxu2 %v606_v5 }
 0x1b8   : > { %v694_v37 = vpop.f32.mrf.mxu1 }
 0x1b9   : > { %v695_v38 = vadd.f32 %v1409_v18, %v694_v37 }
 0x1bb   : > { %778 = vst [vmem:[%s1412_s22 + $0x30] sm:$0xff] %v695_v38  ;;  %741 = vmatmul.f32.gmra.mxu2 %v609_v42 }
 0x1c0   : > { %v697_v40 = vpop.f32.mrf.mxu1 }
 0x1c1   : > { %v698_v41 = vadd.f32 %v1409_v18, %v697_v40 }
 0x1c3   : > { %779 = vst [vmem:[%s1412_s22 + $0x38] sm:$0xff] %v698_v41  ;;  %744 = vmatmul.f32.gmra.mxu2 %v612_v8 }
 0x1c8   : > { %v700_v43 = vpop.f32.mrf.mxu1 }
 0x1c9   : > { %v701_v44 = vadd.f32 %v1409_v18, %v700_v43 }
 0x1cb   : > { %780 = vst [vmem:[%s1412_s22 + $0x40] sm:$0xff] %v701_v44  ;;  %747 = vmatmul.f32.gmra.mxu2 %v615_v10 }
 0x1d0   : > { %v703_v45 = vpop.f32.mrf.mxu1 }
 0x1d1   : > { %v704_v46 = vadd.f32 %v1409_v18, %v703_v45 }
 0x1d3   : > { %781 = vst [vmem:[%s1412_s22 + $0x48] sm:$0xff] %v704_v46  ;;  %750 = vmatmul.f32.gmra.mxu2 %v618_v12 }
 0x1d8   : > { %v706_v47 = vpop.f32.mrf.mxu1 }
 0x1d9   : > { %v707_v48 = vadd.f32 %v1409_v18, %v706_v47 }
 0x1db   : > { %782 = vst [vmem:[%s1412_s22 + $0x50] sm:$0xff] %v707_v48  ;;  %753 = vmatmul.f32.gmra.mxu2 %v621_v14 }
 0x1e0   : > { %v709_v49 = vpop.f32.mrf.mxu1 }
 0x1e1   : > { %v710_v50 = vadd.f32 %v1409_v18, %v709_v49 }
 0x1e3   : > { %783 = vst [vmem:[%s1412_s22 + $0x58] sm:$0xff] %v710_v50  ;;  %756 = vmatmul.f32.gmra.mxu2 %v624_v16 }
 0x1e8   : > { %v712_v51 = vpop.f32.mrf.mxu1 }
 0x1e9   : > { %v713_v52 = vadd.f32 %v1409_v18, %v712_v51 }
 0x1eb   : > { %784 = vst [vmem:[%s1412_s22 + $0x60] sm:$0xff] %v713_v52  ;;  %759 = vmatmul.f32.gmra.mxu2 %v627_v19 }
 0x1f0   : > { %v715_v53 = vpop.f32.mrf.mxu1 }
 0x1f1   : > { %v716_v54 = vadd.f32 %v1409_v18, %v715_v53 }
 0x1f3   : > { %785 = vst [vmem:[%s1412_s22 + $0x68] sm:$0xff] %v716_v54  ;;  %762 = vmatmul.f32.gmra.mxu2 %v630_v23 }
 0x1f8   : > { %v718_v55 = vpop.f32.mrf.mxu1 }
 0x1f9   : > { %v719_v56 = vadd.f32 %v1409_v18, %v718_v55 }
 0x1fb   : > { %786 = vst [vmem:[%s1412_s22 + $0x70] sm:$0xff] %v719_v56 }
 0x206   : > { %v721_v57 = vpop.f32.mrf.mxu2 }
 0x207   : > { %v722_v58 = vadd.f32 %v1409_v18, %v721_v57 }
 0x209   : > { %787 = vst [vmem:[%s1412_s22 + $0x78] sm:$0xff] %v722_v58 }
 0x20e   : > { %v724_v59 = vpop.f32.mrf.mxu2 }
 0x20f   : > { %v725_v60 = vadd.f32 %v1409_v18, %v724_v59 }
 0x211   : > { %788 = vst [vmem:[%s1412_s22 + $0x80] sm:$0xff] %v725_v60 }
 0x216   : > { %v727_v61 = vpop.f32.mrf.mxu2 }
 0x217   : > { %v728_v62 = vadd.f32 %v1409_v18, %v727_v61 }
 0x219   : > { %789 = vst [vmem:[%s1412_s22 + $0x88] sm:$0xff] %v728_v62 }
 0x21c   : > { %v766_v63 = vpop.f32.mrf.mxu3 }
 0x21d   : > { %v767_v0 = vadd.f32 %v1409_v18, %v766_v63 }
 0x21e   : > { %v730_v1 = vpop.f32.mrf.mxu2 }
 0x21f   : > { %802 = vst [vmem:[%s1412_s22 + $0xf0] sm:$0xff] %v767_v0  ;;  %v731_v2 = vadd.f32 %v1409_v18, %v730_v1 }
 0x221   : > { %790 = vst [vmem:[%s1412_s22 + $0x90] sm:$0xff] %v731_v2 }
 0x224   : > { %v769_v3 = vpop.f32.mrf.mxu3 }
 0x225   : > { %v770_v4 = vadd.f32 %v1409_v18, %v769_v3 }
 0x226   : > { %v733_v39 = vpop.f32.mrf.mxu2 }
 0x227   : > { %803 = vst [vmem:[%s1412_s22 + $0xf8] sm:$0xff] %v770_v4  ;;  %v734_v5 = vadd.f32 %v1409_v18, %v733_v39 }
 0x229   : > { %791 = vst [vmem:[%s1412_s22 + $0x98] sm:$0xff] %v734_v5 }
 0x22e   : > { %v736_v6 = vpop.f32.mrf.mxu2 }
 0x22f   : > { %v737_v42 = vadd.f32 %v1409_v18, %v736_v6 }
 0x231   : > { %792 = vst [vmem:[%s1412_s22 + $0xa0] sm:$0xff] %v737_v42 }
 0x236   : > { %v739_v7 = vpop.f32.mrf.mxu2 }
 0x237   : > { %v740_v8 = vadd.f32 %v1409_v18, %v739_v7 }
 0x239   : > { %793 = vst [vmem:[%s1412_s22 + $0xa8] sm:$0xff] %v740_v8 }
 0x23e   : > { %v742_v9 = vpop.f32.mrf.mxu2 }
 0x23f   : > { %v743_v10 = vadd.f32 %v1409_v18, %v742_v9 }
 0x241   : > { %794 = vst [vmem:[%s1412_s22 + $0xb0] sm:$0xff] %v743_v10 }
 0x246   : > { %v745_v11 = vpop.f32.mrf.mxu2 }
 0x247   : > { %v746_v12 = vadd.f32 %v1409_v18, %v745_v11 }
 0x249   : > { %795 = vst [vmem:[%s1412_s22 + $0xb8] sm:$0xff] %v746_v12 }
 0x24e   : > { %v748_v13 = vpop.f32.mrf.mxu2 }
 0x24f   : > { %v749_v14 = vadd.f32 %v1409_v18, %v748_v13 }
 0x251   : > { %796 = vst [vmem:[%s1412_s22 + $0xc0] sm:$0xff] %v749_v14 }
 0x256   : > { %v751_v15 = vpop.f32.mrf.mxu2 }
 0x257   : > { %v752_v16 = vadd.f32 %v1409_v18, %v751_v15 }
 0x259   : > { %797 = vst [vmem:[%s1412_s22 + $0xc8] sm:$0xff] %v752_v16 }
 0x25e   : > { %v754_v17 = vpop.f32.mrf.mxu2 }
 0x25f   : > { %v755_v19 = vadd.f32 %v1409_v18, %v754_v17 }
 0x261   : > { %798 = vst [vmem:[%s1412_s22 + $0xd0] sm:$0xff] %v755_v19 }
 0x266   : > { %v757_v20 = vpop.f32.mrf.mxu2 }
 0x267   : > { %v758_v21 = vadd.f32 %v1409_v18, %v757_v20 }
 0x269   : > { %799 = vst [vmem:[%s1412_s22 + $0xd8] sm:$0xff] %v758_v21 }
 0x26e   : > { %v760_v22 = vpop.f32.mrf.mxu2 }
 0x26f   : > { %v761_v23 = vadd.f32 %v1409_v18, %v760_v22 }
 0x271   : > { %800 = vst [vmem:[%s1412_s22 + $0xe0] sm:$0xff] %v761_v23 }
 0x276   : > { %v763_v24 = vpop.f32.mrf.mxu2 }
 0x277   : > { %v764_v25 = vadd.f32 %v1409_v18, %v763_v24 }
 0x279   : > { %801 = vst [vmem:[%s1412_s22 + $0xe8] sm:$0xff] %v764_v25 }
 0x27a   : > { %1069 = shalt.err (!%p1066_p3)
}
 0x27b   : > { %s1108_s12 = smov 128   ;;  %s1109_s14 = smov 8  }
 0x27c   : > { %995 = dma.vmem_to_hbm [thread:$0]  (%p1173_p5), %s818_s30, 4096, %s820_s5, %s805_s6, %s1108_s12, %s1108_s12, %s1109_s14  }
 0x27d PF: > { %p1001_p4 = scmp.ge.s32.totalorder %s1104_s18, 2  ;;  %s834_s20 = sand.u32 1, %s1092_s15  }
 0x27e   : > { %s835_s22 = scalar_lea.sflag [#allocation3], %s834_s20 }
 0x27f   : > { %p998_p7 = pnand %p1001_p4, %p1177_p6 }
 0x281   : > { %p999_p8 = pneg %p998_p7 }
 0x283   : > { %1087 = dma.done.wait (%p999_p8), %s835_s22, 4096  }
 0x284   : > { %1089 = vsyncadd (%p999_p8), %s835_s22, 4294963200  ;;  %p14_p9 = scmp.ge.s32.totalorder %s1160_s21, 5   ;;  %s1518_s15 = smov %s1096_s16 }
 0x285   : > { %s1519_s16 = smov %s1100_s17  ;;  %s1520_s17 = smov %s1171_s24 }
 0x286   : > { %s1521_s18 = smov %s1160_s21  ;;  %16 = sbr.rel (!%p14_p9) target bundleno = 3 (0x3), region = 71 }
 0x28b   :  { %841 = vsyncpa [#allocation3], 1 }
 0x28c   :  { %843 = vsyncpa [#allocation3 + $0x1], 1 }

</bundles_post_ra>
